<compile_context>
chip_gen: v6e
topology: v6e:2x2x1
jax: 0.10.0
libtpu: 0.0.40
codegen_flags: <defaults>
</compile_context>

<pallas_src>
import functools

import jax
import jax.numpy as jnp
from jax.experimental import pallas as pl
from jax.experimental.pallas import tpu as pltpu


def _round_up(v, m):
    return (v + m - 1) // m * m


def make_mlp_kernel(dim_out_valid):
    """dim_out_valid: number of real (unpadded) output columns (static)."""

    def mlp_kernel(x_ref, w1_ref, b1_ref, w2_ref, b2_ref, o_ref):
        # linear1 (bf16 x bf16 -> f32 acc) + bias + relu, all in f32
        x = x_ref[...]                                              # (TM, Din_p) bf16
        h = jnp.dot(x, w1_ref[...], preferred_element_type=jnp.float32)
        h = jnp.maximum(h + b1_ref[...], 0.0)                       # (TM, Dh_p) f32

        # linear2: cast the activation back to bf16 for the MXU, accumulate f32
        logits = jnp.dot(h.astype(jnp.bfloat16), w2_ref[...],
                         preferred_element_type=jnp.float32) + b2_ref[...]

        # Mask padded output columns so the row-wise reduction is exact.
        # (static python branch: no-op when dim_out is already lane-aligned)
        if dim_out_valid < logits.shape[-1]:
            col = jax.lax.broadcasted_iota(jnp.int32, logits.shape, 1)
            logits = jnp.where(col < dim_out_valid, logits, -1e30)

        # numerically stable log_softmax along the feature (lane) axis, in f32
        m = jnp.max(logits, axis=-1, keepdims=True)
        s = logits - m
        lse = jnp.log(jnp.sum(jnp.exp(s), axis=-1, keepdims=True))
        o_ref[...] = (s - lse).astype(o_ref.dtype)

    return mlp_kernel


@functools.partial(jax.jit, static_argnames=("tm",))
def mlp_forward(x, w1, b1, w2, b2, *, tm=None):
    """x: (N, dim_in); w1: (dim_h, dim_in); b1: (dim_h,);
    w2: (dim_out, dim_h); b2: (dim_out,)  — PyTorch Linear conventions."""
    n, dim_in = x.shape
    dim_h = w1.shape[0]
    dim_out = w2.shape[0]

    # lane-dense padded feature dims
    din_p = _round_up(dim_in, 128)
    dh_p = _round_up(dim_h, 128)
    dout_p = _round_up(dim_out, 128)

    # batch tile: large enough to amortize the ~0.35us/step overhead but modest
    # w.r.t. the smallest (v7x, 64 MiB) VMEM; small batches get a single tile.
    if tm is None:
        tm = 256 if n >= 256 else _round_up(n, 16)
    n_p = _round_up(n, tm)

    # wrapper-side glue: pad, cast matmul operands to bf16, pre-transpose weights
    x_p = jnp.zeros((n_p, din_p), jnp.bfloat16).at[:n, :dim_in].set(
        x.astype(jnp.bfloat16))
    w1t = jnp.zeros((din_p, dh_p), jnp.bfloat16).at[:dim_in, :dim_h].set(
        w1.T.astype(jnp.bfloat16))
    w2t = jnp.zeros((dh_p, dout_p), jnp.bfloat16).at[:dim_h, :dim_out].set(
        w2.T.astype(jnp.bfloat16))
    b1r = jnp.zeros((1, dh_p), jnp.float32).at[0, :dim_h].set(b1.astype(jnp.float32))
    b2r = jnp.zeros((1, dout_p), jnp.float32).at[0, :dim_out].set(b2.astype(jnp.float32))

    # explicit scoped-VMEM budget: double-buffered x/out tiles + resident weights
    # + intermediate headroom, with margin; capped well below v7x's 64 MiB.
    est = (2 * tm * din_p * 2 + 2 * tm * dout_p * 4
           + (din_p * dh_p + dh_p * dout_p) * 2
           + (dh_p + dout_p) * 4
           + 2 * tm * (dh_p + dout_p) * 4)
    vmem_limit = int(min(max(4 * est, 16 * 1024 * 1024), 48 * 1024 * 1024))

    grid = (n_p // tm,)
    out_p = pl.pallas_call(
        make_mlp_kernel(dim_out),
        out_shape=jax.ShapeDtypeStruct((n_p, dout_p), jnp.float32),
        grid_spec=pltpu.PrefetchScalarGridSpec(
            num_scalar_prefetch=0,
            grid=grid,
            in_specs=[
                pl.BlockSpec((tm, din_p), lambda i: (i, 0)),     # x tile (pipelined)
                pl.BlockSpec((din_p, dh_p), lambda i: (0, 0)),   # w1t resident
                pl.BlockSpec((1, dh_p), lambda i: (0, 0)),       # b1 resident
                pl.BlockSpec((dh_p, dout_p), lambda i: (0, 0)),  # w2t resident
                pl.BlockSpec((1, dout_p), lambda i: (0, 0)),     # b2 resident
            ],
            out_specs=pl.BlockSpec((tm, dout_p), lambda i: (i, 0)),
        ),
        compiler_params=pltpu.CompilerParams(
            dimension_semantics=("parallel",),      # shard batch tiles across TCs (v7x)
            vmem_limit_bytes=vmem_limit,
        ),
    )(x_p, w1t, b1r, w2t, b2r)

    return out_p[:n, :dim_out]


if __name__ == "__main__":
    # small shapes consistent with the module: N x dim_in -> dim_h -> dim_out
    N, dim_in, dim_h, dim_out = 8, 16, 32, 8

    key = jax.random.PRNGKey(0)
    kx, kw1, kb1, kw2, kb2 = jax.random.split(key, 5)

    x = jax.random.normal(kx, (N, dim_in), dtype=jnp.float32)
    # PyTorch Linear shapes: weight (out, in), bias (out,)
    w1 = jax.random.normal(kw1, (dim_h, dim_in), dtype=jnp.float32) * 0.1
    b1 = jax.random.normal(kb1, (dim_h,), dtype=jnp.float32) * 0.1
    w2 = jax.random.normal(kw2, (dim_out, dim_h), dtype=jnp.float32) * 0.1
    b2 = jax.random.normal(kb2, (dim_out,), dtype=jnp.float32) * 0.1

    out = mlp_forward(x, w1, b1, w2, b2)
    jax.block_until_ready(out)
    assert out.shape == (N, dim_out)

    # reference mimicking the kernel's bf16 matmul operands / f32 accumulation
    xb = x.astype(jnp.bfloat16).astype(jnp.float32)
    w1b = w1.astype(jnp.bfloat16).astype(jnp.float32)
    w2b = w2.astype(jnp.bfloat16).astype(jnp.float32)
    h_ref = jnp.maximum(xb @ w1b.T + b1, 0.0)
    logits_ref = h_ref.astype(jnp.bfloat16).astype(jnp.float32) @ w2b.T + b2
    ref_bf16 = jax.nn.log_softmax(logits_ref, axis=1)
    assert jnp.allclose(out, ref_bf16, atol=1e-3, rtol=1e-3)

    # loose check against the pure-f32 PyTorch-equivalent forward
    ref_f32 = jax.nn.log_softmax(jnp.maximum(x @ w1.T + b1, 0.0) @ w2.T + b2, axis=1)
    assert jnp.allclose(out, ref_f32, atol=3e-2, rtol=3e-2)

    print("KERNEL_OK")
</pallas_src>

<mosaic_0001>
module attributes {stable_mosaic.version = 11 : i64} {
  func.func @mlp_kernel(%arg0: i32, %arg1: memref<16x128xbf16, #tpu.memory_space<vmem>>, %arg2: memref<128x128xbf16, #tpu.memory_space<vmem>>, %arg3: memref<1x128xf32, #tpu.memory_space<vmem>>, %arg4: memref<128x128xbf16, #tpu.memory_space<vmem>>, %arg5: memref<1x128xf32, #tpu.memory_space<vmem>>, %arg6: memref<16x128xf32, #tpu.memory_space<vmem>>) attributes {dimension_semantics = [#tpu.dimension_semantics<parallel>], iteration_bounds = array<i64: 1>, scalar_prefetch = 0 : i64, scratch_operands = 0 : i64, tpu.core_type = #tpu.core_type<tc>, window_params = [{transform_indices = @transform_0, window_bounds = array<i64: 16, 128>}, {pipeline_mode = #tpu.pipeline_mode<synchronous>, transform_indices = @transform_1, window_bounds = array<i64: 128, 128>}, {pipeline_mode = #tpu.pipeline_mode<synchronous>, transform_indices = @transform_2, window_bounds = array<i64: 1, 128>}, {pipeline_mode = #tpu.pipeline_mode<synchronous>, transform_indices = @transform_3, window_bounds = array<i64: 128, 128>}, {pipeline_mode = #tpu.pipeline_mode<synchronous>, transform_indices = @transform_4, window_bounds = array<i64: 1, 128>}, {transform_indices = @transform_5, window_bounds = array<i64: 16, 128>}]} {
    %c0 = arith.constant 0 : index
    %c0_0 = arith.constant 0 : index
    %0 = vector.load %arg1[%c0, %c0_0] : memref<16x128xbf16, #tpu.memory_space<vmem>>, vector<16x128xbf16>
    %c0_1 = arith.constant 0 : index
    %c0_2 = arith.constant 0 : index
    %1 = vector.load %arg2[%c0_1, %c0_2] : memref<128x128xbf16, #tpu.memory_space<vmem>>, vector<128x128xbf16>
    %cst = arith.constant dense<0.000000e+00> : vector<16x128xf32>
    %2 = tpu.matmul %0, %1, %cst {dimension_numbers = #tpu.dot_dimension_numbers<[1], [0], [0], [1], [0, 0, 1, 1], [], []>} : vector<16x128xbf16>, vector<128x128xbf16>, vector<16x128xf32> -> vector<16x128xf32>
    %c0_3 = arith.constant 0 : index
    %c0_4 = arith.constant 0 : index
    %3 = vector.load %arg3[%c0_3, %c0_4] : memref<1x128xf32, #tpu.memory_space<vmem>>, vector<1x128xf32>
    %4 = vector.broadcast %3 : vector<1x128xf32> to vector<16x128xf32>
    %5 = arith.addf %2, %4 : vector<16x128xf32>
    %cst_5 = arith.constant 0.000000e+00 : f32
    %6 = vector.broadcast %cst_5 : f32 to vector<16x128xf32>
    %7 = arith.maximumf %5, %6 : vector<16x128xf32>
    %8 = arith.truncf %7 : vector<16x128xf32> to vector<16x128xbf16>
    %c0_6 = arith.constant 0 : index
    %c0_7 = arith.constant 0 : index
    %9 = vector.load %arg4[%c0_6, %c0_7] : memref<128x128xbf16, #tpu.memory_space<vmem>>, vector<128x128xbf16>
    %cst_8 = arith.constant dense<0.000000e+00> : vector<16x128xf32>
    %10 = tpu.matmul %8, %9, %cst_8 {dimension_numbers = #tpu.dot_dimension_numbers<[1], [0], [0], [1], [0, 0, 1, 1], [], []>} : vector<16x128xbf16>, vector<128x128xbf16>, vector<16x128xf32> -> vector<16x128xf32>
    %c0_9 = arith.constant 0 : index
    %c0_10 = arith.constant 0 : index
    %11 = vector.load %arg5[%c0_9, %c0_10] : memref<1x128xf32, #tpu.memory_space<vmem>>, vector<1x128xf32>
    %12 = vector.broadcast %11 : vector<1x128xf32> to vector<16x128xf32>
    %13 = arith.addf %10, %12 : vector<16x128xf32>
    %14 = tpu.iota {dimensions = array<i32: 1>} : vector<16x128xi32>
    %c8_i32 = arith.constant 8 : i32
    %15 = vector.broadcast %c8_i32 : i32 to vector<16x128xi32>
    %16 = arith.cmpi slt, %14, %15 : vector<16x128xi32>
    %cst_11 = arith.constant -1.000000e+30 : f32
    %17 = vector.broadcast %cst_11 : f32 to vector<16x128xf32>
    %18 = arith.select %16, %13, %17 : vector<16x128xi1>, vector<16x128xf32>
    %cst_12 = arith.constant dense<0xFF800000> : vector<16xf32>
    %19 = vector.multi_reduction <maximumf>, %18, %cst_12 [1] : vector<16x128xf32> to vector<16xf32>
    %20 = vector.shape_cast %19 : vector<16xf32> to vector<16x1xf32>
    %21 = vector.broadcast %20 : vector<16x1xf32> to vector<16x128xf32>
    %22 = arith.subf %18, %21 : vector<16x128xf32>
    %23 = math.exp %22 : vector<16x128xf32>
    %cst_13 = arith.constant dense<0.000000e+00> : vector<16xf32>
    %24 = vector.multi_reduction <add>, %23, %cst_13 [1] : vector<16x128xf32> to vector<16xf32>
    %25 = vector.shape_cast %24 : vector<16xf32> to vector<16x1xf32>
    %26 = math.log %25 : vector<16x1xf32>
    %27 = vector.broadcast %26 : vector<16x1xf32> to vector<16x128xf32>
    %28 = arith.subf %22, %27 : vector<16x128xf32>
    %c0_14 = arith.constant 0 : index
    %c0_15 = arith.constant 0 : index
    %29 = vector.load %arg6[%c0_14, %c0_15] : memref<16x128xf32, #tpu.memory_space<vmem>>, vector<16x128xf32>
    tpu.vector_store %arg6[%c0_14, %c0_15], %28 {strides = array<i32>} : memref<16x128xf32, #tpu.memory_space<vmem>>, vector<16x128xf32>,
    return
  }
  func.func @transform_0(%arg0: i32) -> (i32, i32) {
    %c0_i32 = arith.constant 0 : i32
    %c0_i32_0 = arith.constant 0 : i32
    return %arg0, %c0_i32 : i32, i32
  }
  func.func @transform_1(%arg0: i32) -> (i32, i32) {
    %c0_i32 = arith.constant 0 : i32
    %c0_i32_0 = arith.constant 0 : i32
    %c0_i32_1 = arith.constant 0 : i32
    return %c0_i32, %c0_i32_0 : i32, i32
  }
  func.func @transform_2(%arg0: i32) -> (i32, i32) {
    %c0_i32 = arith.constant 0 : i32
    %c0_i32_0 = arith.constant 0 : i32
    %c0_i32_1 = arith.constant 0 : i32
    return %c0_i32, %c0_i32_0 : i32, i32
  }
  func.func @transform_3(%arg0: i32) -> (i32, i32) {
    %c0_i32 = arith.constant 0 : i32
    %c0_i32_0 = arith.constant 0 : i32
    %c0_i32_1 = arith.constant 0 : i32
    return %c0_i32, %c0_i32_0 : i32, i32
  }
  func.func @transform_4(%arg0: i32) -> (i32, i32) {
    %c0_i32 = arith.constant 0 : i32
    %c0_i32_0 = arith.constant 0 : i32
    %c0_i32_1 = arith.constant 0 : i32
    return %c0_i32, %c0_i32_0 : i32, i32
  }
  func.func @transform_5(%arg0: i32) -> (i32, i32) {
    %c0_i32 = arith.constant 0 : i32
    %c0_i32_0 = arith.constant 0 : i32
    return %arg0, %c0_i32 : i32, i32
  }
}

</mosaic_0001>

<bundles_post_ra>
// kernel: mlp_forward.1
= control target key start
LH: loop header
LB: loop body
LE: loop exit
PB: predicated region body
PF: predicated region fallthrough
CT: control target
= control target key end

     0   :  { %v391_v0 = vmov 0.0   ;;  %vm392_vm0 = vmmov 0   ;;  %v256_v28 = vlaneseq  ;;  %s486_s1 = inlined_call_operand.vmem [shape: bf16[128,128], index: 1, kind: input, shape index: {}]   ;;  %s487_s3 = inlined_call_operand.vmem [shape: bf16[128,128], index: 3, kind: input, shape index: {}]   ;;  %s488_s0 = inlined_call_operand.vmem [shape: bf16[16,128], index: 0, kind: input, shape index: {}]   ;;  %s489_s2 = inlined_call_operand.vmem [shape: f32[1,128], index: 2, kind: input, shape index: {}]   ;;  %s490_s4 = inlined_call_operand.vmem [shape: f32[1,128], index: 4, kind: input, shape index: {}]   ;;  %s491_s5 = inlined_call_operand.vmem [shape: f32[16,128], index: 5, kind: output, shape index: {}]  }
   0x1   :  { %324 = vmatprep.subr.bf16.mxu0 %v391_v0  ;;  %v366_v1 = vld [vmem:[%s486_s1 + $0x38] sm:$0xff]   ;;  %340 = vmatprep.mubr.msk.bf16.mxu0 %vm392_vm0, %v391_v0  ;;  %v367_v2 = vld [vmem:[%s486_s1 + $0x30] sm:$0xff]   ;;  %v368_v3 = vld [vmem:[%s486_s1 + $0x28] sm:$0xff]  }
   0x2   :  { %344 = vmatprep.subr.bf16.mxu1 %v391_v0  ;;  %360 = vmatprep.mubr.msk.bf16.mxu1 %vm392_vm0, %v391_v0  ;;  %v375_v4 = vld [vmem:[%s487_s3 + $0x38] sm:$0xff]   ;;  %v369_v5 = vld [vmem:[%s486_s1 + $0x20] sm:$0xff]   ;;  %v376_v6 = vld [vmem:[%s487_s3 + $0x30] sm:$0xff]   ;;  %v257_v29 = vand.u32 127, %v256_v28 }
   0x3   :  { %325 = vmatpush3.bf16.msra.mxu0 %v366_v1  ;;  %345 = vmatpush3.bf16.msra.mxu1 %v375_v4  ;;  %v370_v7 = vld [vmem:[%s486_s1 + $0x18] sm:$0xff]   ;;  %v377_v8 = vld [vmem:[%s487_s3 + $0x28] sm:$0xff]   ;;  %v371_v9 = vld [vmem:[%s486_s1 + $0x10] sm:$0xff]  }
   0x4   :  { %326 = vmatprep.subr.bf16.mxu0 %v391_v0  ;;  %346 = vmatprep.subr.bf16.mxu1 %v391_v0  ;;  %v378_v10 = vld [vmem:[%s487_s3 + $0x20] sm:$0xff]   ;;  %v372_v11 = vld [vmem:[%s486_s1 + $0x8] sm:$0xff]   ;;  %v379_v12 = vld [vmem:[%s487_s3 + $0x18] sm:$0xff]   ;;  %vm258_vm1 = vcmp.lt.s32.totalorder %v257_v29, 8 }
   0x5   :  { %v373_v13 = vld [vmem:[%s486_s1] sm:$0xff]   ;;  %v380_v15 = vld [vmem:[%s487_s3 + $0x10] sm:$0xff]   ;;  %v381_v16 = vld [vmem:[%s487_s3 + $0x8] sm:$0xff]  }
   0x6   :  { %v374_v14 = vld [vmem:[%s488_s0] sm:$0xff]  }
   0x7   :  { %327 = vmatpush3.bf16.msra.mxu0 %v367_v2  ;;  %347 = vmatpush3.bf16.msra.mxu1 %v376_v6  ;;  %v382_v17 = vld [vmem:[%s487_s3] sm:$0xff]  }
   0x8   :  { %328 = vmatprep.subr.bf16.mxu0 %v391_v0  ;;  %348 = vmatprep.subr.bf16.mxu1 %v391_v0  ;;  %v287_v18 = vld [vmem:[%s489_s2] ss:$0 sm:$0xff] }
   0x9   :  { %v297_v30 = vld [vmem:[%s490_s4] ss:$0 sm:$0xff] }
   0xb   :  { %329 = vmatpush3.bf16.msra.mxu0 %v368_v3  ;;  %349 = vmatpush3.bf16.msra.mxu1 %v377_v8 }
   0xc   :  { %330 = vmatprep.subr.bf16.mxu0 %v391_v0  ;;  %350 = vmatprep.subr.bf16.mxu1 %v391_v0 }
   0xf   :  { %331 = vmatpush3.bf16.msra.mxu0 %v369_v5  ;;  %351 = vmatpush3.bf16.msra.mxu1 %v378_v10 }
  0x10   :  { %332 = vmatprep.subr.bf16.mxu0 %v391_v0  ;;  %352 = vmatprep.subr.bf16.mxu1 %v391_v0 }
  0x13   :  { %333 = vmatpush3.bf16.msra.mxu0 %v370_v7  ;;  %353 = vmatpush3.bf16.msra.mxu1 %v379_v12 }
  0x14   :  { %334 = vmatprep.subr.bf16.mxu0 %v391_v0  ;;  %354 = vmatprep.subr.bf16.mxu1 %v391_v0 }
  0x17   :  { %335 = vmatpush3.bf16.msra.mxu0 %v371_v9  ;;  %355 = vmatpush3.bf16.msra.mxu1 %v380_v15 }
  0x18   :  { %336 = vmatprep.subr.bf16.mxu0 %v391_v0  ;;  %356 = vmatprep.subr.bf16.mxu1 %v391_v0 }
  0x1b   :  { %337 = vmatpush3.bf16.msra.mxu0 %v372_v11  ;;  %357 = vmatpush3.bf16.msra.mxu1 %v381_v16 }
  0x1c   :  { %338 = vmatprep.subr.bf16.mxu0 %v391_v0  ;;  %358 = vmatprep.subr.bf16.mxu1 %v391_v0 }
  0x1f   :  { %339 = vmatpush3.bf16.msra.mxu0 %v373_v13  ;;  %359 = vmatpush3.bf16.msra.mxu1 %v382_v17 }
  0x22   :  { %341 = vmatmul.mubr.bf16.vlgmr.msra.gmra.mxu0 %v374_v14 }
  0xe2   :  { %v134_v19 = vpop.f32.mrf.mxu0 }
  0xe3   :  { %v135_v21 = vadd.f32 %v287_v18, %v134_v19 }
  0xe4   :  { %v342_v20 = vpop.f32.mrf.mxu0 }
  0xe5   :  { %v141_v25 = vmax.f32 %v135_v21, 0.0 }
  0xe6   :  { %v137_v22 = vpop.f32.mrf.mxu0 }
  0xe7   :  { %v138_v23 = vadd.f32 %v287_v18, %v137_v22 }
  0xe8   :  { %v343_v24 = vpop.f32.mrf.mxu0 }
  0xe9   :  { %v142_v26 = vmax.f32 %v138_v23, 0.0 }
  0xeb   :  { %v143_v27 = vpack.c.bf16 %v142_v26, %v141_v25 }
  0xed   :  { %361 = vmatmul.mubr.bf16.vlgmr.msra.gmra.mxu1 %v143_v27 }
 0x1ad   :  { %v249_v31 = vpop.f32.mrf.mxu1 }
 0x1ae   :  { %v250_v32 = vadd.f32 %v297_v30, %v249_v31 }
 0x1af   :  { %v362_v33 = vpop.f32.mrf.mxu1 }
 0x1b0   :  { %v259_v34 = vsel %vm258_vm1, %v250_v32, -1e+30 }
 0x1b1   :  { %261 = vmax.xlane.f32.xlu0 %v259_v34  ;;  %v252_v35 = vpop.f32.mrf.mxu1 }
 0x1b2   :  { %v253_v36 = vadd.f32 %v297_v30, %v252_v35 }
 0x1b3   :  { %v363_v37 = vpop.f32.mrf.mxu1 }
 0x1b4   :  { %v260_v38 = vsel %vm258_vm1, %v253_v36, -1e+30 }
 0x1b5   :  { %263 = vmax.xlane.f32.xlu0 %v260_v38 }
 0x23a   :  { %v262_v39 = vpop.xlane.xlu0 %261 }
 0x23b   :  { %v265_v40 = vsub.f32 %v259_v34, %v262_v39 }
 0x23d   :  { %v267_v41 = vmul.f32 1.442695, %v265_v40 }
 0x23e   :  { %v264_v42 = vpop.xlane.xlu0 %263 }
 0x23f   :  { %v266_v43 = vsub.f32 %v260_v38, %v264_v42  ;;  %383 = vpow2.f32 %v267_v41 }
 0x241   :  { %v269_v44 = vmul.f32 1.442695, %v266_v43 }
 0x243   :  { %385 = vpow2.f32 %v269_v44 }
 0x24c   :  { %v384_v45 = vpop.eup %383 }
 0x24d   :  { %271 = vadd.xlane.f32.xlu1 %v384_v45 }
 0x250   :  { %v386_v46 = vpop.eup %385 }
 0x251   :  { %273 = vadd.xlane.f32.xlu1 %v386_v46 }
 0x2d6   :  { %v272_v47 = vpop.xlane.xlu1 %271 }
 0x2d7   :  { %387 = vlog2.f32 %v272_v47 }
 0x2da   :  { %v274_v48 = vpop.xlane.xlu1 %273 }
 0x2db   :  { %389 = vlog2.f32 %v274_v48 }
 0x2e4   :  { %v388_v49 = vpop.eup %387 }
 0x2e5   :  { %v276_v50 = vmul.f32 0.6931472, %v388_v49 }
 0x2e7   :  { %v279_v51 = vsub.f32 %v265_v40, %v276_v50 }
 0x2e8   :  { %v390_v52 = vpop.eup %389 }
 0x2e9   :  { %281 = vst [vmem:[%s491_s5] sm:$0xff] %v279_v51  ;;  %v278_v53 = vmul.f32 0.6931472, %v390_v52 }
 0x2eb   :  { %v280_v54 = vsub.f32 %v266_v43, %v278_v53 }
 0x2ed   :  { %282 = vst [vmem:[%s491_s5 + $0x8] sm:$0xff] %v280_v54 }

</bundles_post_ra>
